<compile_context>
chip_gen: v6e
topology: v6e:2x2x1
jax: 0.10.0
libtpu: 0.0.40
codegen_flags: <defaults>
</compile_context>

<pallas_src>
import math

import jax
import jax.numpy as jnp
from jax.experimental import pallas as pl
from jax.experimental.pallas import tpu as pltpu


def _round_up(v, m):
    return ((v + m - 1) // m) * m


def _vmem_budget_bytes():
    """~75% of physical VMEM; falls back to a v7x-safe figure (64 MiB -> 48 MiB)."""
    cap = 64 * 1024 * 1024
    try:
        info = pltpu.get_tpu_info()
        cap = int(getattr(info, "vmem_capacity_bytes", cap) or cap)
    except Exception:
        pass
    return min((cap * 3) // 4, 100 * 1024 * 1024)


def _linear_bias_kernel(x_ref, wt_ref, b_ref, o_ref):
    """One (tm, tn) output tile with the full K reduction in a single MXU pass."""
    o_ref[...] = (
        jnp.dot(x_ref[...], wt_ref[...], preferred_element_type=jnp.float32)
        + b_ref[...]
    ).astype(o_ref.dtype)


def classifier_forward(x, w_t, bias2d, *, compute_dtype=None):
    """Pallas equivalent of nn.Linear(c_in, nattr)(x).

    x:      (M, c_in)
    w_t:    (c_in, nattr)  -- weight stored PRE-TRANSPOSED (and pre-cast) at init
    bias2d: (1, nattr) float32 -- reshaped/cast once at init
    compute_dtype: optional MXU operand dtype (e.g. jnp.bfloat16); accumulation
                   stays f32.  For best results pass bf16 x from upstream
                   instead (the cast here is an extra un-hidden pass over x).
    returns (M, nattr) in x's original dtype.
    """
    M, K = x.shape
    K2, N = w_t.shape
    assert K == K2, "c_in mismatch"
    assert bias2d.shape == (1, N)

    out_dtype = x.dtype
    if compute_dtype is not None and x.dtype != compute_dtype:
        x = x.astype(compute_dtype)

    x_isz = jnp.dtype(x.dtype).itemsize
    w_isz = jnp.dtype(w_t.dtype).itemsize
    o_isz = jnp.dtype(out_dtype).itemsize
    sub = max(8, 32 // x_isz)  # sublane packing: 8 (f32), 16 (bf16), 32 (8-bit)

    budget = _vmem_budget_bytes()

    # ---- N tiling: keep the whole nattr axis in one block when modest
    #      (masked stores on a tiny tile beat pad+slice passes); otherwise
    #      256-lane tiles to match the v6e/v7x 2x256x256 MXU. ----
    tn = N if N <= 2048 else 256
    grid_n = pl.cdiv(N, tn)

    # ---- M tiling: largest tm that fits the VMEM budget. ----
    # double-buffered: x tile, output tile; weight slab + bias (also 2 bufs).
    fixed = 2 * (K * tn * w_isz + tn * 4)
    per_row = 2 * (K * x_isz + tn * o_isz)
    tm_cap = max(sub, (budget - fixed) // max(per_row, 1))
    tm = min(1024, tm_cap, _round_up(M, sub))
    tm = max(sub, (tm // sub) * sub)
    grid_m = pl.cdiv(M, tm)

    # v7x megacore: if everything fit in one row tile but there are enough
    # rows, split M so the "parallel" axis shards across both TensorCores.
    if grid_m == 1 and M >= 2 * sub:
        tm = _round_up(pl.cdiv(M, 2), sub)
        grid_m = pl.cdiv(M, tm)

    vmem_need = (
        2 * tm * K * x_isz + 2 * K * tn * w_isz + 2 * tm * tn * o_isz + 2 * tn * 4
    )
    # TODO(synk): if c_in ever gets so large that even a sub-row x tile plus the
    # (K, tn) weight slab overflows VMEM, reintroduce a K grid axis with an f32
    # accumulator (not the typical regime for a classifier head).

    out = pl.pallas_call(
        _linear_bias_kernel,
        out_shape=jax.ShapeDtypeStruct((M, N), out_dtype),
        grid_spec=pltpu.PrefetchScalarGridSpec(
            num_scalar_prefetch=0,
            grid=(grid_m, grid_n),
            in_specs=[
                pl.BlockSpec((tm, K), lambda i, j: (i, 0)),   # x: streamed over M
                pl.BlockSpec((K, tn), lambda i, j: (0, j)),   # w_t: resident
                pl.BlockSpec((1, tn), lambda i, j: (0, j)),   # bias: resident
            ],
            out_specs=pl.BlockSpec((tm, tn), lambda i, j: (i, j)),
        ),
        compiler_params=pltpu.CompilerParams(
            dimension_semantics=("parallel", "parallel"),
            vmem_limit_bytes=max(budget, _round_up(vmem_need, 1 << 20)),
        ),
    )(x, w_t, bias2d)
    return out


def init_classifier_params(key, c_in, nattr, *, param_dtype=jnp.float32):
    """Matches Classifier.__init__:
    - weight: xavier_uniform (bound = sqrt(6/(fan_in+fan_out)))
    - bias:   PyTorch Linear default, uniform(-1/sqrt(fan_in), 1/sqrt(fan_in))

    Weight is returned pre-transposed to (c_in, nattr) and pre-cast to
    param_dtype; bias is returned as (1, nattr) f32.  All layout/dtype work is
    paid once here, never per forward call.
    """
    kw, kb = jax.random.split(key)
    xavier_bound = math.sqrt(6.0 / (c_in + nattr))
    weight = jax.random.uniform(
        kw, (nattr, c_in), jnp.float32, minval=-xavier_bound, maxval=xavier_bound
    )
    bias_bound = 1.0 / math.sqrt(c_in)
    bias = jax.random.uniform(
        kb, (nattr,), jnp.float32, minval=-bias_bound, maxval=bias_bound
    )
    w_t = weight.T.astype(param_dtype)            # one-time transpose (+ cast)
    bias2d = bias.reshape(1, nattr).astype(jnp.float32)
    return w_t, bias2d


if __name__ == "__main__":
    key = jax.random.PRNGKey(0)
    k_x, k_params = jax.random.split(key)

    batch = 8
    c_in = 32
    nattr = 16

    x = jax.random.normal(k_x, (batch, c_in), dtype=jnp.float32)
    w_t, bias2d = init_classifier_params(k_params, c_in, nattr)

    logits = classifier_forward(x, w_t, bias2d)
    jax.block_until_ready(logits)

    # sanity check vs plain-JAX reference
    ref = x @ w_t + bias2d[0]
    assert logits.shape == (batch, nattr)
    assert jnp.allclose(logits, ref, atol=1e-5, rtol=1e-5)

    print("KERNEL_OK")
</pallas_src>

<mosaic_0001>
module attributes {stable_mosaic.version = 11 : i64} {
  func.func @_linear_bias_kernel(%arg0: i32, %arg1: i32, %arg2: memref<8x32xf32, #tpu.memory_space<vmem>>, %arg3: memref<32x16xf32, #tpu.memory_space<vmem>>, %arg4: memref<1x16xf32, #tpu.memory_space<vmem>>, %arg5: memref<8x16xf32, #tpu.memory_space<vmem>>) attributes {dimension_semantics = [#tpu.dimension_semantics<parallel>, #tpu.dimension_semantics<parallel>], iteration_bounds = array<i64: 1, 1>, scalar_prefetch = 0 : i64, scratch_operands = 0 : i64, tpu.core_type = #tpu.core_type<tc>, window_params = [{transform_indices = @transform_0, window_bounds = array<i64: 8, 32>}, {transform_indices = @transform_1, window_bounds = array<i64: 32, 16>}, {transform_indices = @transform_2, window_bounds = array<i64: 1, 16>}, {transform_indices = @transform_3, window_bounds = array<i64: 8, 16>}]} {
    %c0 = arith.constant 0 : index
    %c0_0 = arith.constant 0 : index
    %0 = vector.load %arg2[%c0, %c0_0] : memref<8x32xf32, #tpu.memory_space<vmem>>, vector<8x32xf32>
    %c0_1 = arith.constant 0 : index
    %c0_2 = arith.constant 0 : index
    %1 = vector.load %arg3[%c0_1, %c0_2] : memref<32x16xf32, #tpu.memory_space<vmem>>, vector<32x16xf32>
    %cst = arith.constant dense<0.000000e+00> : vector<8x16xf32>
    %2 = tpu.matmul %0, %1, %cst {dimension_numbers = #tpu.dot_dimension_numbers<[1], [0], [0], [1], [0, 0, 1, 1], [], []>} : vector<8x32xf32>, vector<32x16xf32>, vector<8x16xf32> -> vector<8x16xf32>
    %c0_3 = arith.constant 0 : index
    %c0_4 = arith.constant 0 : index
    %3 = vector.load %arg4[%c0_3, %c0_4] : memref<1x16xf32, #tpu.memory_space<vmem>>, vector<1x16xf32>
    %4 = vector.broadcast %3 : vector<1x16xf32> to vector<8x16xf32>
    %5 = arith.addf %2, %4 : vector<8x16xf32>
    %c0_5 = arith.constant 0 : index
    %c0_6 = arith.constant 0 : index
    %6 = vector.load %arg5[%c0_5, %c0_6] : memref<8x16xf32, #tpu.memory_space<vmem>>, vector<8x16xf32>
    tpu.vector_store %arg5[%c0_5, %c0_6], %5 {strides = array<i32>} : memref<8x16xf32, #tpu.memory_space<vmem>>, vector<8x16xf32>,
    return
  }
  func.func @transform_0(%arg0: i32, %arg1: i32) -> (i32, i32) {
    %c0_i32 = arith.constant 0 : i32
    %c0_i32_0 = arith.constant 0 : i32
    return %arg0, %c0_i32 : i32, i32
  }
  func.func @transform_1(%arg0: i32, %arg1: i32) -> (i32, i32) {
    %c0_i32 = arith.constant 0 : i32
    %c0_i32_0 = arith.constant 0 : i32
    return %c0_i32, %arg1 : i32, i32
  }
  func.func @transform_2(%arg0: i32, %arg1: i32) -> (i32, i32) {
    %c0_i32 = arith.constant 0 : i32
    %c0_i32_0 = arith.constant 0 : i32
    return %c0_i32, %arg1 : i32, i32
  }
  func.func @transform_3(%arg0: i32, %arg1: i32) -> (i32, i32) {
    %c0_i32 = arith.constant 0 : i32
    return %arg0, %arg1 : i32, i32
  }
}

</mosaic_0001>

<bundles_post_ra>
// kernel: tpu_custom_call.1
= control target key start
LH: loop header
LB: loop body
LE: loop exit
PB: predicated region body
PF: predicated region fallthrough
CT: control target
= control target key end

     0   :  { %v160_v1 = vmov 0.0   ;;  %vm161_vm0 = vmmov 0   ;;  %s204_s0 = inlined_call_operand.vmem [shape: f32[8,32], index: 0, kind: input, shape index: {}]   ;;  %s205_s1 = inlined_call_operand.vmem [shape: f32[32,16], index: 1, kind: input, shape index: {}]   ;;  %s206_s2 = inlined_call_operand.vmem [shape: f32[1,16], index: 2, kind: input, shape index: {}]   ;;  %s207_s3 = inlined_call_operand.hbm [shape: f32[8,16], index: 3, kind: output, shape index: {}]  }
   0x1   :  { %v19_v0 = vld [vmem:[%s205_s1 + $0x18] sm:$0xff]  ;;  %124 = vmatprep.subr.mxu0 %v160_v1  ;;  %v18_v2 = vld [vmem:[%s205_s1 + $0x10] sm:$0xff]  ;;  %132 = vmatprep.mubr.msk.f32.mxu0 %vm161_vm0, %v160_v1 }
   0x2   :  { %125 = vmatpush3.msra.mxu0 %v19_v0 }
   0x3   :  { %8 = vsyncpa [#allocation3], 0  ;;  %126 = vmatprep.subr.mxu0 %v160_v1  ;;  %v17_v3 = vld [vmem:[%s205_s1 + $0x8] sm:$0xff]  ;;  %v16_v4 = vld [vmem:[%s205_s1] sm:$0xff]  ;;  %vm27_vm1 = vcmask 261120   ;;  %s162_s24 = smov [#allocation2]  }
   0x4   :  { %127 = vmatpush3.msra.mxu0 %v18_v2  ;;  %v15_v5 = vld [vmem:[%s204_s0] sm:$0xff]  ;;  %s109_s25 = sshll.u32 %s162_s24, 4  ;;  %vm101_vm2 = vcmask 130048   ;;  %s110_s25 = int_to_ptr.vmem [resolvable:$true] %s109_s25 }
   0x5   :  { %128 = vmatprep.subr.mxu0 %v160_v1  ;;  %v117_v6 = vld [vmem:[%s206_s2] ss:$0 sm:$0xff]  ;;  %s138_s1 = scalar_lea.vmem %s110_s25, 128  ;;  %p143_p1 = scmp.lt.s32.totalorder %s110_s25, %s110_s25 }
   0x6   :  { %129 = vmatpush3.msra.mxu0 %v17_v3  ;;  %p139_p0 = scmp.ne.s32.totalorder %s110_s25, %s138_s1  ;;  %p144_p2 = scmp.lt.s32.totalorder %s138_s1, %s138_s1 }
   0x7   :  { %130 = vmatprep.subr.mxu0 %v160_v1 }
   0x8   :  { %131 = vmatpush3.msra.mxu0 %v16_v4  ;;  %p145_p3 = por %p144_p2, %p143_p1 }
   0x9   :  { %133 = vmatmul.mubr.msk.f32.vlgmr.msra.gmra.mxu0 %vm27_vm1, %v15_v5 }
   0xa   :  { %p146_p4 = pnand %p145_p3, %p139_p0 }
  0xc9   :  { %v97_v7 = vpop.f32.mrf.mxu0 }
  0xca   :  { %v98_v8 = vadd.f32 %v117_v6, %v97_v7 }
  0xcb   :  { %v134_v9 = vpop.f32.mrf.mxu0 }
  0xcc   :  { %102 = vst.msk [vmem:[#allocation2] sm:$0xff] %vm101_vm2, %v98_v8 }
  0xcd   :  { %149 = shalt.err (!%p146_p4)
}
  0xce   :  { %112 = dma.vmem_to_hbm [thread:$0]  %s110_s25, 128, %s207_s3, [#allocation3]  }
  0xcf   :  { %158 = dma.done.wait [#allocation3], 128  }
  0xd0   :  { %159 = vsyncadd [#allocation3], 4294967168 }
  0xd1   :  { %116 = vsyncpa [#allocation3], 1 }

</bundles_post_ra>
